<compile_context>
chip_gen: v6e
topology: v6e:2x2x1
jax: 0.10.0
libtpu: 0.0.40
codegen_flags: <defaults>
</compile_context>

<pallas_src>
import jax
import jax.numpy as jnp
from jax.experimental import pallas as pl
from jax.experimental.pallas import tpu as pltpu


_SUBLANE = 8
_LANE = 128
_TARGET_BLOCK_BYTES = 4 << 20   # per-buffer budget (post sublane/lane padding)
_MIN_GRID = 8                   # target grid steps (pipelining + megacore split)


def _round_up(x, m):
    return ((x + m - 1) // m) * m


def _round_down_floor(x, m):
    return max(m, (x // m) * m)


def _pick_tile(full, unit, max_tile):
    """Largest usable block size <= max_tile along an axis of length `full`.

    Blocks are either the full axis (exempt from the (8,128) rule) or a
    multiple of `unit`; exact divisors of `full` are preferred so the last
    tile is never partial (keeps every store unmasked).
    """
    if full <= unit or full <= max_tile:
        return full
    cap = _round_down_floor(min(max_tile, full), unit)
    t = cap
    while t >= unit:
        if full % t == 0:
            return t
        t -= unit
    return cap


def _normalize_kernel(x_ref, scale_ref, bias_ref, o_ref):
    """One (tm, tk) tile: out = x * (1/std) + (-mean/std), per-row broadcast."""
    x = x_ref[...].astype(scale_ref.dtype)
    o_ref[...] = (x * scale_ref[...] + bias_ref[...]).astype(o_ref.dtype)


def normalize_pallas(img, mean, std):
    """Pallas equivalent of Normalization.forward for (C,H,W) or (N,C,H,W)."""
    orig_shape = img.shape
    img4 = img[None] if img.ndim == 3 else img
    n, c, h, w = img4.shape

    # Floating inputs keep their dtype (bf16 stays bf16 on v6e/v7x); integer
    # images are promoted to f32 (the PyTorch module also returns floats).
    if jnp.issubdtype(img.dtype, jnp.floating):
        compute_dtype = img.dtype
    else:
        compute_dtype = jnp.float32

    # Flattening: prefer a row count that is a multiple of 8 (sublane-dense).
    if (n * c) % _SUBLANE != 0 and w % _LANE == 0:
        M, K = n * c * h, w
        rows_per_channel = h
    else:
        M, K = n * c, h * w
        rows_per_channel = 1

    x2 = img4.reshape(M, K)

    # Precomputed per-row scale/bias: out = x * (1/std) + (-mean/std).
    mean_f = jnp.asarray(mean, jnp.float32).reshape(-1)
    std_f = jnp.asarray(std, jnp.float32).reshape(-1)
    scale_c = 1.0 / std_f
    bias_c = -mean_f * scale_c
    scale_rows = jnp.repeat(jnp.tile(scale_c, n), rows_per_channel)
    bias_rows = jnp.repeat(jnp.tile(bias_c, n), rows_per_channel)
    scale_rows = scale_rows.reshape(M, 1).astype(compute_dtype)
    bias_rows = bias_rows.reshape(M, 1).astype(compute_dtype)

    in_itemsize = jnp.dtype(img.dtype).itemsize
    out_itemsize = jnp.dtype(compute_dtype).itemsize
    itemsize = max(in_itemsize, out_itemsize)

    Mp = _round_up(M, _SUBLANE)
    Kp = _round_up(K, _LANE)

    def lane_cap(rows):
        return _round_down_floor(
            _TARGET_BLOCK_BYTES // (_round_up(rows, _SUBLANE) * itemsize), _LANE)

    def row_cap(lanes):
        return _round_down_floor(
            _TARGET_BLOCK_BYTES // (_round_up(lanes, _LANE) * itemsize), _SUBLANE)

    # Tile the axis with more slack first so the grid has >= ~_MIN_GRID steps;
    # the other axis takes whatever still fits the per-buffer VMEM budget.
    if (Mp // _SUBLANE) >= (Kp // _LANE):
        tm_target = max(_SUBLANE, _round_up(pl.cdiv(M, _MIN_GRID), _SUBLANE))
        tm = _pick_tile(M, _SUBLANE, min(tm_target, row_cap(K)))
        tk = _pick_tile(K, _LANE, lane_cap(tm))
    else:
        tk_target = max(_LANE, _round_up(pl.cdiv(K, _MIN_GRID), _LANE))
        tk = _pick_tile(K, _LANE, min(tk_target, lane_cap(M)))
        tm = _pick_tile(M, _SUBLANE, row_cap(tk))

    grid = (pl.cdiv(M, tm), pl.cdiv(K, tk))

    # Honest VMEM accounting (sublane/lane-padded, double-buffered in+out plus
    # the tiny resident scale/bias vectors), with headroom.
    blk_pad = _round_up(tm, _SUBLANE) * _round_up(tk, _LANE)
    vec_pad = _round_up(tm, _SUBLANE) * _LANE
    footprint = 2 * blk_pad * (in_itemsize + out_itemsize) + 4 * vec_pad * out_itemsize
    vmem_limit = int(min(64 << 20, max(32 << 20, footprint + (8 << 20))))

    out2 = pl.pallas_call(
        _normalize_kernel,
        out_shape=jax.ShapeDtypeStruct((M, K), compute_dtype),
        grid=grid,
        in_specs=[
            pl.BlockSpec((tm, tk), lambda i, j: (i, j)),
            pl.BlockSpec((tm, 1), lambda i, j: (i, 0)),
            pl.BlockSpec((tm, 1), lambda i, j: (i, 0)),
        ],
        out_specs=pl.BlockSpec((tm, tk), lambda i, j: (i, j)),
        compiler_params=pltpu.CompilerParams(
            dimension_semantics=("parallel", "parallel"),
            vmem_limit_bytes=vmem_limit,
        ),
        cost_estimate=pl.CostEstimate(
            flops=2 * M * K,
            transcendentals=0,
            bytes_accessed=M * K * (in_itemsize + out_itemsize) + 2 * M * out_itemsize,
        ),
    )(x2, scale_rows, bias_rows)

    return out2.reshape(orig_shape)


class Normalization:
    """JAX mirror of the PyTorch Normalization module."""

    def __init__(self, mean, std):
        self.mean = jnp.asarray(mean).reshape(-1, 1, 1)
        self.std = jnp.asarray(std).reshape(-1, 1, 1)

    def __call__(self, img):
        return normalize_pallas(img, self.mean, self.std)


def _normalize_ref(img, mean, std):
    m = jnp.asarray(mean, jnp.float32).reshape(1, -1, 1, 1)
    s = jnp.asarray(std, jnp.float32).reshape(1, -1, 1, 1)
    img4 = img[None] if img.ndim == 3 else img
    out = (img4.astype(jnp.float32) - m) / s
    return out.reshape(img.shape)


if __name__ == "__main__":
    key = jax.random.PRNGKey(0)
    k_img, k_mean, k_std = jax.random.split(key, 3)

    N, C, H, W = 2, 4, 16, 16
    img = jax.random.normal(k_img, (N, C, H, W), dtype=jnp.float32)
    mean = 0.1 * jax.random.normal(k_mean, (C,), dtype=jnp.float32)
    std = 0.5 + jax.random.uniform(k_std, (C,), dtype=jnp.float32)  # positive

    module = Normalization(mean, std)
    out = module(img)
    jax.block_until_ready(out)

    out_ref = _normalize_ref(img, mean, std)
    assert out.shape == img.shape
    assert jnp.allclose(out.astype(jnp.float32), out_ref, atol=1e-5, rtol=1e-5), \
        "Normalization mismatch"

    print("KERNEL_OK")
</pallas_src>

<mosaic_0001>
module attributes {stable_mosaic.version = 11 : i64} {
  func.func @_normalize_kernel(%arg0: i32, %arg1: i32, %arg2: memref<8x128xf32, #tpu.memory_space<vmem>>, %arg3: memref<8x1xf32, #tpu.memory_space<vmem>>, %arg4: memref<8x1xf32, #tpu.memory_space<vmem>>, %arg5: memref<8x128xf32, #tpu.memory_space<vmem>>) attributes {dimension_semantics = [#tpu.dimension_semantics<parallel>, #tpu.dimension_semantics<parallel>], iteration_bounds = array<i64: 1, 2>, scalar_prefetch = 0 : i64, scratch_operands = 0 : i64, tpu.core_type = #tpu.core_type<tc>, window_params = [{transform_indices = @transform_0, window_bounds = array<i64: 8, 128>}, {transform_indices = @transform_1, window_bounds = array<i64: 8, 1>}, {transform_indices = @transform_2, window_bounds = array<i64: 8, 1>}, {transform_indices = @transform_3, window_bounds = array<i64: 8, 128>}]} {
    %c0 = arith.constant 0 : index
    %c0_0 = arith.constant 0 : index
    %0 = vector.load %arg2[%c0, %c0_0] : memref<8x128xf32, #tpu.memory_space<vmem>>, vector<8x128xf32>
    %c0_1 = arith.constant 0 : index
    %c0_2 = arith.constant 0 : index
    %1 = vector.load %arg3[%c0_1, %c0_2] : memref<8x1xf32, #tpu.memory_space<vmem>>, vector<8x1xf32>
    %2 = vector.broadcast %1 : vector<8x1xf32> to vector<8x128xf32>
    %3 = arith.mulf %0, %2 : vector<8x128xf32>
    %c0_3 = arith.constant 0 : index
    %c0_4 = arith.constant 0 : index
    %4 = vector.load %arg4[%c0_3, %c0_4] : memref<8x1xf32, #tpu.memory_space<vmem>>, vector<8x1xf32>
    %5 = vector.broadcast %4 : vector<8x1xf32> to vector<8x128xf32>
    %6 = arith.addf %3, %5 : vector<8x128xf32>
    %c0_5 = arith.constant 0 : index
    %c0_6 = arith.constant 0 : index
    %7 = vector.load %arg5[%c0_5, %c0_6] : memref<8x128xf32, #tpu.memory_space<vmem>>, vector<8x128xf32>
    tpu.vector_store %arg5[%c0_5, %c0_6], %6 {strides = array<i32>} : memref<8x128xf32, #tpu.memory_space<vmem>>, vector<8x128xf32>,
    return
  }
  func.func @transform_0(%arg0: i32, %arg1: i32) -> (i32, i32) {
    %c0_i32 = arith.constant 0 : i32
    return %arg0, %arg1 : i32, i32
  }
  func.func @transform_1(%arg0: i32, %arg1: i32) -> (i32, i32) {
    %c0_i32 = arith.constant 0 : i32
    %c0_i32_0 = arith.constant 0 : i32
    return %arg0, %c0_i32 : i32, i32
  }
  func.func @transform_2(%arg0: i32, %arg1: i32) -> (i32, i32) {
    %c0_i32 = arith.constant 0 : i32
    %c0_i32_0 = arith.constant 0 : i32
    return %arg0, %c0_i32 : i32, i32
  }
  func.func @transform_3(%arg0: i32, %arg1: i32) -> (i32, i32) {
    %c0_i32 = arith.constant 0 : i32
    return %arg0, %arg1 : i32, i32
  }
}

</mosaic_0001>

<bundles_post_ra>
// kernel: tpu_custom_call.1
= control target key start
LH: loop header
LB: loop body
LE: loop exit
PB: predicated region body
PF: predicated region fallthrough
CT: control target
= control target key end

     0   :  { %8 = vsyncpa [#allocation3], 0  ;;  %s640_s0 = inlined_call_operand.vmem [shape: f32[8,256], index: 0, kind: input, shape index: {}]   ;;  %s641_s1 = inlined_call_operand.vmem [shape: f32[8,1], index: 1, kind: input, shape index: {}]   ;;  %s642_s2 = inlined_call_operand.vmem [shape: f32[8,1], index: 2, kind: input, shape index: {}]   ;;  %s643_s3 = inlined_call_operand.hbm [shape: f32[8,256], index: 3, kind: output, shape index: {}]  }
   0x1   :  { %10 = vsyncpa [#allocation3 + $0x1], 0  ;;  %s535_s12 = smov 0   ;;  %s537_s13 = smov 0  }
   0x2   :  { %s539_s14 = smov 0   ;;  %s541_s15 = smov 0  }
   0x3   :  { %s543_s16 = smov 0   ;;  %s545_s17 = smov 0  }
   0x4 LB: > { %s365_s18 = sadd.s32 4294967295, %s511_s17   ;;  %s366_s19 = sadd.s32 4294967294, %s511_s17   ;;  %s511_s17 = sphi %s545_s17, %s16_s17   ;;  %s507_s16 = sphi %s543_s16, %s650_s16   ;;  %s503_s15 = sphi %s541_s15, %s649_s15   ;;  %s499_s14 = sphi %s539_s14, %s648_s14   ;;  %s495_s13 = sphi %s537_s13, %s647_s13   ;;  %s491_s12 = sphi %s535_s12, %s646_s12  }
   0x5   : > { %s25_s20 = sadd.s32 1, %s507_s16  ;;  %s117_s21 = sadd.s32 1, %s499_s14 }
   0x6   : > { %p26_p0 = scmp.ge.s32.totalorder %s25_s20, 2  ;;  %p127_p1 = scmp.ne.s32.totalorder %s499_s14, %s495_s13 }
   0x7   : > { %p128_p2 = scmp.eq.s32.totalorder %s365_s18, 1  ;;  %p133_p3 = scmp.ne.s32.totalorder %s495_s13, %s491_s12 }
   0x8   : > { %s652_s20 = smov (%p26_p0, %s25_s20), 0  ;;  %p134_p5 = scmp.eq.s32.totalorder %s366_s19, 1 }
   0x9   : > { %p575_p4 = por %p128_p2, %p127_p1  ;;  %s113_s23 = ssub.s32 %s507_s16, %s652_s20 }
   0xa   : > { %p371_p6 = scmp.ge.s32.totalorder %s511_s17, 1  ;;  %p115_p7 = scmp.eq.s32.totalorder %s113_s23, 0 }
   0xb   : > { %p582_p8 = por %p134_p5, %p133_p3  ;;  %p177_p9 = scmp.lt.s32.totalorder %s511_s17, 3 }
   0xc   : > { %s588_s25 = scalar_select %p115_p7, %s499_s14, %s117_s21  }
   0xd   : > { %p178_p10 = pnand %p371_p6, %p177_p9 }
   0xe   : > { %p214_p11 = scmp.lt.s32.totalorder (!%p178_p10), %s503_s15, 1  ;;  %s209_s4 = sand.u32 (!%p178_p10), 1, %s495_s13  }
   0xf   : > { %181 = sbr.rel (%p178_p10) target bundleno = 165 (0xa5), region = 32  ;;  %s372_s6 = sshll.u32 (!%p178_p10), %s209_s4, 3 }
  0x10   : > { %s375_s10 = sshll.u32 (!%p178_p10), %s503_s15, 7  ;;  %s211_s11 = scalar_lea.vmem (!%p178_p10), [#allocation2], %s372_s6 }
  0x11   : > { %s260_s18 = sshll.u32 (!%p178_p10), %s211_s11, 4  ;;  %s258_s23 = scalar_lea.hbm (!%p178_p10), %s643_s3, %s375_s10  ;;  %s261_s18 = int_to_ptr.vmem [resolvable:$true] %s260_s18 }
  0x12   : > { %s245_s26 = scalar_lea.sflag (!%p178_p10), [#allocation3], %s209_s4  ;;  %s435_s27 = scalar_lea.vmem (!%p178_p10), %s261_s18, 128 }
  0x13   : > { %p436_p12 = scmp.ne.s32.totalorder (!%p178_p10), %s261_s18, %s435_s27  ;;  %s514_s28 = smov (!%p178_p10), [#allocation2]  }
  0x14   : > { %v229_v0 = vld [vmem:[%s641_s1] sm:$0xff]  ;;  %v513_v1 = vmov 0   ;;  %s215_s30 = scalar_select %p214_p11, %s503_s15, 1 }
  0x15   : > { %434 = vset.pattern.permute.xlu0 %v513_v1  ;;  %v236_v2 = vld [vmem:[%s642_s2] sm:$0xff]  ;;  %p437_p13 = pnand %p436_p12, %p575_p4  ;;  %s439_s29 = sshll.u32 %s514_s28, 4  ;;  %s440_s29 = int_to_ptr.vmem [resolvable:$false] %s439_s29 }
  0x16   : > { %232 = vperm.xlu0 %434, %v229_v0   ;;  %s373_s5 = sshll.u32 %s215_s30, 3  ;;  %s441_s15 = scalar_lea.vmem %s440_s29, 256 }
  0x17   : > { %s219_s9 = scalar_lea.vmem %s640_s0, %s373_s5  ;;  %p438_p0 = pneg %p437_p13 }
  0x18   : > { %v228_v4 = vld [vmem:[%s219_s9] sm:$0xff]  ;;  %p442_p1 = scmp.lt.s32.totalorder %s261_s18, %s440_s29  ;;  %p443_p2 = scmp.lt.s32.totalorder %s441_s15, %s435_s27 }
  0x1a   : > { %239 = vperm.xlu0 %434, %v236_v2   ;;  %p444_p3 = por %p443_p2, %p442_p1 }
  0x1c   : > { %p445_p5 = pnand %p444_p3, %p438_p0 }
  0x91   : > { %v233_v3 = vpop.permute.xlu0 %232 }
  0x92   : > { %v235_v5 = vmul.f32 %v233_v3, %v228_v4 }
  0x95   : > { %v240_v6 = vpop.permute.xlu0 %239 }
  0x96   : > { %v242_v7 = vadd.f32 %v240_v6, %v235_v5 }
  0x98   : > { %243 = vst [vmem:[%s211_s11] sm:$0xff] %v242_v7 }
  0x99   : > { %448 = shalt.err (!%p445_p5)
}
  0x9a   : > { %s449_s30 = scalar_lea.hbm %s258_s23, 128  ;;  %s453_s6 = scalar_lea.hbm %s643_s3, 256 }
  0x9b   : > { %p450_p6 = scmp.ne.s32.totalorder %s258_s23, %s449_s30  ;;  %p454_p10 = scmp.lt.s32.totalorder %s258_s23, %s643_s3 }
  0x9c   : > { %p455_p11 = scmp.lt.s32.totalorder %s453_s6, %s449_s30 }
  0x9d   : > { %p451_p7 = pnand %p450_p6, %p575_p4 }
  0x9e   : > { %p456_p12 = por %p455_p11, %p454_p10 }
  0x9f   : > { %p452_p9 = pneg %p451_p7 }
  0xa1   : > { %p457_p13 = pnand %p456_p12, %p452_p9 }
  0xa3   : > { %460 = shalt.err (!%p457_p13)
}
  0xa4   : > { %378 = dma.vmem_to_hbm [thread:$0]  (%p575_p4), %s261_s18, 128, %s258_s23, %s245_s26  }
  0xa5 PF: > { %p384_p0 = scmp.ge.s32.totalorder %s511_s17, 2  ;;  %s272_s9 = sand.u32 1, %s491_s12  }
  0xa6   : > { %s273_s10 = scalar_lea.sflag [#allocation3], %s272_s9 }
  0xa7   : > { %p381_p1 = pnand %p384_p0, %p582_p8 }
  0xa9   : > { %p382_p2 = pneg %p381_p1 }
  0xab   : > { %486 = dma.done.wait (%p382_p2), %s273_s10, 128  }
  0xac   : > { %488 = vsyncadd (%p382_p2), %s273_s10, 4294967168  ;;  %s16_s17 = sadd.s32 1, %s511_s17   ;;  %s646_s12 = smov %s495_s13 }
  0xad   : > { %p13_p3 = scmp.ge.s32.totalorder %s16_s17, 4   ;;  %s647_s13 = smov %s499_s14 }
  0xae   : > { %s648_s14 = smov %s588_s25  ;;  %s649_s15 = smov %s507_s16 }
  0xaf   : > { %s650_s16 = smov %s652_s20  ;;  %15 = sbr.rel (!%p13_p3) target bundleno = 4 (0x4), region = 73 }
  0xb4   :  { %278 = vsyncpa [#allocation3], 1 }
  0xb5   :  { %280 = vsyncpa [#allocation3 + $0x1], 1 }

</bundles_post_ra>
